<compile_context>
chip_gen: v7x
topology: tpu7x:2x2x1
jax: 0.10.0
libtpu: 0.0.40
codegen_flags: <defaults>
</compile_context>

<pallas_src>
import functools

import jax
import jax.numpy as jnp
from jax import lax
from jax.experimental import pallas as pl
from jax.experimental.pallas import tpu as pltpu

KH = KW = 4          # ConvTranspose2d kernel_size=4
STRIDE = 2
PAD = 1
EPS = 1e-5           # InstanceNorm2d default eps


def _pick_ctile(cout):
    """Cout tile size: multiple of 8 (sublane), small enough to keep the
    (16*TC, H*W) f32 accumulator + blocks under default scoped VMEM."""
    for t in (32, 16, 8):
        if cout % t == 0:
            return t
    return cout


def _unet_up_kernel(x_ref, w_ref, o_ref, *, hh, ww, tc):
    """One (sample, Cout-tile) grid step.

    x_ref: (1, Cin, P)       bf16  input, spatially flattened (P = hh*ww)
    w_ref: (1, 16*tc, Cin)   bf16  weight, row index = (kh*4+kw)*tc + co_local
    o_ref: (1, 2, 2, tc, P)  f32   conv->IN->ReLU, parity-decomposed:
                                   o[0, r, s, c, i*ww + j] = out[c, 2i+r, 2j+s]
    """
    P = hh * ww

    # ---- MXU: all 16 taps for this channel tile in one dense matmul --------
    y = jnp.dot(w_ref[0], x_ref[0], preferred_element_type=jnp.float32)  # (16*tc, P)

    def tap(kh, kw):
        k = kh * 4 + kw
        return y[k * tc:(k + 1) * tc, :]            # (tc, P), static slice

    # ---- fixed-pattern overlap-add (col2im) on the flattened spatial axis --
    def shift(a, amt):
        # out[:, p] = a[:, p - amt], zero where p - amt falls outside [0, P)
        if amt == 0:
            return a
        if abs(amt) >= P:
            return jnp.zeros_like(a)
        z = jnp.zeros((tc, abs(amt)), jnp.float32)
        if amt > 0:
            return jnp.concatenate([z, a[:, :P - amt]], axis=1)
        return jnp.concatenate([a[:, -amt:], z], axis=1)

    # column-boundary masks (hoisted, shared by all parities)
    col = lax.broadcasted_iota(jnp.int32, (tc, P), 1) % ww
    mask_pos = col >= 1            # used when the column shift reads j-1
    mask_neg = col <= ww - 2       # used when the column shift reads j+1

    def parity(r, s):
        # output row 2i+r gets taps kh0 (from row i) and kh1 (from row i-dh);
        # same structure along columns.
        dh, kh0, kh1 = (1, 1, 3) if r == 0 else (-1, 2, 0)
        dw, kw0, kw1 = (1, 1, 3) if s == 0 else (-1, 2, 0)
        m = mask_pos if dw == 1 else mask_neg
        acc = tap(kh0, kw0)
        acc = acc + shift(tap(kh1, kw0), dh * ww)
        acc = acc + jnp.where(m, shift(tap(kh0, kw1), dw), 0.0)
        acc = acc + jnp.where(m, shift(tap(kh1, kw1), dh * ww + dw), 0.0)
        return acc

    y00, y01 = parity(0, 0), parity(0, 1)
    y10, y11 = parity(1, 0), parity(1, 1)

    # ---- InstanceNorm2d (affine=False, biased var) + ReLU, stats in f32 ----
    inv_n = 1.0 / (4.0 * P)
    mean = (y00.sum(1, keepdims=True) + y01.sum(1, keepdims=True)
            + y10.sum(1, keepdims=True) + y11.sum(1, keepdims=True)) * inv_n
    d00, d01, d10, d11 = y00 - mean, y01 - mean, y10 - mean, y11 - mean
    var = ((d00 * d00).sum(1, keepdims=True) + (d01 * d01).sum(1, keepdims=True)
           + (d10 * d10).sum(1, keepdims=True) + (d11 * d11).sum(1, keepdims=True)) * inv_n
    scale = lax.rsqrt(var + EPS)

    o_ref[0, 0, 0] = jnp.maximum(d00 * scale, 0.0).astype(o_ref.dtype)
    o_ref[0, 0, 1] = jnp.maximum(d01 * scale, 0.0).astype(o_ref.dtype)
    o_ref[0, 1, 0] = jnp.maximum(d10 * scale, 0.0).astype(o_ref.dtype)
    o_ref[0, 1, 1] = jnp.maximum(d11 * scale, 0.0).astype(o_ref.dtype)


@jax.jit
def unet_up_forward(x, skip_input, w):
    """x: (N, Cin, H, W); skip_input: (N, Cskip, 2H, 2W); w: (Cin, Cout, 4, 4).
    Returns (N, Cout + Cskip, 2H, 2W) float32, matching UNetUp.forward
    (dropout=0.0 -> no dropout layer)."""
    N, Cin, H, W = x.shape
    Cout = w.shape[1]
    Ho, Wo = STRIDE * H, STRIDE * W
    P = H * W
    tc = _pick_ctile(Cout)
    n_ct = Cout // tc

    # bf16 operands for the MXU (accumulation stays f32 inside the kernel).
    xb = x.reshape(N, Cin, P).astype(jnp.bfloat16)
    # (Cin, Cout, 4, 4) -> (n_ct, 16*tc, Cin), row = (kh*4+kw)*tc + co_local.
    wt = jnp.transpose(w, (2, 3, 1, 0)).reshape(16, n_ct, tc, Cin)
    wt = jnp.transpose(wt, (1, 0, 2, 3)).reshape(n_ct, 16 * tc, Cin)
    wt = wt.astype(jnp.bfloat16)

    kernel = functools.partial(_unet_up_kernel, hh=H, ww=W, tc=tc)
    conv_par = pl.pallas_call(
        kernel,
        out_shape=jax.ShapeDtypeStruct((N, 2, 2, Cout, P), jnp.float32),
        grid_spec=pltpu.PrefetchScalarGridSpec(
            num_scalar_prefetch=0,
            grid=(N, n_ct),
            in_specs=[
                # x block stays resident across the inner Cout-tile loop.
                pl.BlockSpec((1, Cin, P), lambda n, c: (n, 0, 0)),
                pl.BlockSpec((1, 16 * tc, Cin), lambda n, c: (c, 0, 0)),
            ],
            out_specs=pl.BlockSpec((1, 2, 2, tc, P),
                                   lambda n, c: (n, 0, 0, c, 0)),
        ),
        compiler_params=pltpu.CompilerParams(
            dimension_semantics=("parallel", "parallel")),
    )(xb, wt)

    # Parity planes -> NCHW, then concat with skip (single fused XLA copy).
    y = conv_par.reshape(N, 2, 2, Cout, H, W)
    y = jnp.transpose(y, (0, 3, 4, 1, 5, 2)).reshape(N, Cout, Ho, Wo)
    return jnp.concatenate([y, skip_input], axis=1)


def _reference(x, skip_input, w):
    """Pure-JAX reference mirroring the PyTorch module."""
    w_t = jnp.flip(w, axis=(2, 3)).transpose(1, 0, 2, 3)   # (Cout, Cin, 4, 4)
    y = lax.conv_general_dilated(
        x, w_t,
        window_strides=(1, 1),
        padding=[(KH - 1 - PAD, KH - 1 - PAD)] * 2,
        lhs_dilation=(STRIDE, STRIDE),
        dimension_numbers=("NCHW", "OIHW", "NCHW"),
        precision=lax.Precision.HIGHEST)
    mean = jnp.mean(y, axis=(2, 3), keepdims=True)
    var = jnp.mean((y - mean) ** 2, axis=(2, 3), keepdims=True)
    y = jnp.maximum((y - mean) * lax.rsqrt(var + EPS), 0.0)
    return jnp.concatenate([y, skip_input], axis=1)


if __name__ == "__main__":
    key = jax.random.PRNGKey(0)
    k_x, k_skip, k_w = jax.random.split(key, 3)

    N, Cin, H, W = 2, 8, 16, 16
    Cout = 8
    Ho, Wo = STRIDE * H, STRIDE * W

    x = jax.random.normal(k_x, (N, Cin, H, W), dtype=jnp.float32)
    skip = jax.random.normal(k_skip, (N, Cout, Ho, Wo), dtype=jnp.float32)
    # PyTorch ConvTranspose2d weight shape: (in_channels, out_channels, kH, kW)
    w = 0.1 * jax.random.normal(k_w, (Cin, Cout, KH, KW), dtype=jnp.float32)

    out = jax.block_until_ready(unet_up_forward(x, skip, w))
    assert out.shape == (N, 2 * Cout, Ho, Wo), out.shape

    # Reference on the same bf16-rounded operands the kernel consumes.
    x_r = x.astype(jnp.bfloat16).astype(jnp.float32)
    w_r = w.astype(jnp.bfloat16).astype(jnp.float32)
    ref = jax.block_until_ready(_reference(x_r, skip, w_r))
    err = float(jnp.max(jnp.abs(out - ref)))
    assert err < 1e-3, err

    print("KERNEL_OK")
</pallas_src>

<mosaic_0001>
module attributes {stable_mosaic.version = 11 : i64} {
  func.func @_unet_up_kernel(%arg0: i32, %arg1: i32, %arg2: memref<1x8x256xbf16, #tpu.memory_space<vmem>>, %arg3: memref<1x128x8xbf16, #tpu.memory_space<vmem>>, %arg4: memref<1x2x2x8x256xf32, #tpu.memory_space<vmem>>) attributes {dimension_semantics = [#tpu.dimension_semantics<parallel>, #tpu.dimension_semantics<parallel>], iteration_bounds = array<i64: 2, 1>, scalar_prefetch = 0 : i64, scratch_operands = 0 : i64, tpu.core_type = #tpu.core_type<tc>, window_params = [{transform_indices = @transform_0, window_bounds = array<i64: 1, 8, 256>}, {transform_indices = @transform_1, window_bounds = array<i64: 1, 128, 8>}, {transform_indices = @transform_2, window_bounds = array<i64: 1, 2, 2, 8, 256>}]} {
    %c0 = arith.constant 0 : index
    %c0_0 = arith.constant 0 : index
    %c0_1 = arith.constant 0 : index
    %0 = vector.load %arg3[%c0, %c0_0, %c0_1] : memref<1x128x8xbf16, #tpu.memory_space<vmem>>, vector<1x128x8xbf16>
    %1 = vector.shape_cast %0 : vector<1x128x8xbf16> to vector<128x8xbf16>
    %c0_2 = arith.constant 0 : index
    %c0_3 = arith.constant 0 : index
    %c0_4 = arith.constant 0 : index
    %2 = vector.load %arg2[%c0_2, %c0_3, %c0_4] : memref<1x8x256xbf16, #tpu.memory_space<vmem>>, vector<1x8x256xbf16>
    %3 = vector.shape_cast %2 : vector<1x8x256xbf16> to vector<8x256xbf16>
    %cst = arith.constant dense<0.000000e+00> : vector<128x256xf32>
    %4 = tpu.matmul %1, %3, %cst {dimension_numbers = #tpu.dot_dimension_numbers<[1], [0], [0], [1], [0, 0, 1, 1], [], []>} : vector<128x8xbf16>, vector<8x256xbf16>, vector<128x256xf32> -> vector<128x256xf32>
    %5 = tpu.iota {dimensions = array<i32: 1>} : vector<8x256xi32>
    %c16_i32 = arith.constant 16 : i32
    %c0_i32 = arith.constant 0 : i32
    %6 = arith.cmpi eq, %c16_i32, %c0_i32 : i32
    %c1_i32 = arith.constant 1 : i32
    %7 = arith.select %6, %c1_i32, %c16_i32 : i32
    %8 = vector.broadcast %7 : i32 to vector<8x256xi32>
    %9 = arith.remsi %5, %8 : vector<8x256xi32>
    %c0_i32_5 = arith.constant 0 : i32
    %10 = vector.broadcast %c0_i32_5 : i32 to vector<8x256xi32>
    %11 = arith.cmpi ne, %9, %10 : vector<8x256xi32>
    %c0_i32_6 = arith.constant 0 : i32
    %12 = vector.broadcast %c0_i32_6 : i32 to vector<8x256xi32>
    %13 = arith.cmpi slt, %9, %12 : vector<8x256xi32>
    %c0_i32_7 = arith.constant 0 : i32
    %14 = arith.cmpi slt, %7, %c0_i32_7 : i32
    %15 = vector.broadcast %14 : i1 to vector<8x256xi1>
    %16 = vector.broadcast %15 : vector<8x256xi1> to vector<8x256xi1>
    %17 = arith.xori %13, %16 : vector<8x256xi1>
    %18 = arith.andi %17, %11 : vector<8x256xi1>
    %19 = vector.broadcast %7 : i32 to vector<8x256xi32>
    %20 = arith.addi %9, %19 : vector<8x256xi32>
    %21 = arith.select %18, %20, %9 : vector<8x256xi1>, vector<8x256xi32>
    %c1_i32_8 = arith.constant 1 : i32
    %22 = vector.broadcast %c1_i32_8 : i32 to vector<8x256xi32>
    %23 = arith.cmpi sge, %21, %22 : vector<8x256xi32>
    %c14_i32 = arith.constant 14 : i32
    %24 = vector.broadcast %c14_i32 : i32 to vector<8x256xi32>
    %25 = arith.cmpi sle, %21, %24 : vector<8x256xi32>
    %26 = vector.extract_strided_slice %4 {offsets = [40, 0], sizes = [8, 256], strides = [1, 1]} : vector<128x256xf32> to vector<8x256xf32>
    %27 = vector.extract_strided_slice %4 {offsets = [104, 0], sizes = [8, 256], strides = [1, 1]} : vector<128x256xf32> to vector<8x256xf32>
    %cst_9 = arith.constant 0.000000e+00 : f32
    %28 = vector.broadcast %cst_9 : f32 to vector<8x16xf32>
    %29 = vector.extract_strided_slice %27 {offsets = [0, 0], sizes = [8, 240], strides = [1, 1]} : vector<8x256xf32> to vector<8x240xf32>
    %30 = tpu.concatenate %28, %29 in 1 : vector<8x16xf32>, vector<8x240xf32> -> vector<8x256xf32>
    %31 = arith.addf %26, %30 : vector<8x256xf32>
    %32 = vector.extract_strided_slice %4 {offsets = [56, 0], sizes = [8, 256], strides = [1, 1]} : vector<128x256xf32> to vector<8x256xf32>
    %cst_10 = arith.constant 0.000000e+00 : f32
    %33 = vector.broadcast %cst_10 : f32 to vector<8x1xf32>
    %34 = vector.extract_strided_slice %32 {offsets = [0, 0], sizes = [8, 255], strides = [1, 1]} : vector<8x256xf32> to vector<8x255xf32>
    %35 = tpu.concatenate %33, %34 in 1 : vector<8x1xf32>, vector<8x255xf32> -> vector<8x256xf32>
    %cst_11 = arith.constant 0.000000e+00 : f32
    %36 = vector.broadcast %cst_11 : f32 to vector<8x256xf32>
    %37 = arith.select %23, %35, %36 : vector<8x256xi1>, vector<8x256xf32>
    %38 = arith.addf %31, %37 : vector<8x256xf32>
    %39 = vector.extract_strided_slice %4 {offsets = [120, 0], sizes = [8, 256], strides = [1, 1]} : vector<128x256xf32> to vector<8x256xf32>
    %cst_12 = arith.constant 0.000000e+00 : f32
    %40 = vector.broadcast %cst_12 : f32 to vector<8x17xf32>
    %41 = vector.extract_strided_slice %39 {offsets = [0, 0], sizes = [8, 239], strides = [1, 1]} : vector<8x256xf32> to vector<8x239xf32>
    %42 = tpu.concatenate %40, %41 in 1 : vector<8x17xf32>, vector<8x239xf32> -> vector<8x256xf32>
    %cst_13 = arith.constant 0.000000e+00 : f32
    %43 = vector.broadcast %cst_13 : f32 to vector<8x256xf32>
    %44 = arith.select %23, %42, %43 : vector<8x256xi1>, vector<8x256xf32>
    %45 = arith.addf %38, %44 : vector<8x256xf32>
    %46 = vector.extract_strided_slice %4 {offsets = [48, 0], sizes = [8, 256], strides = [1, 1]} : vector<128x256xf32> to vector<8x256xf32>
    %47 = vector.extract_strided_slice %4 {offsets = [112, 0], sizes = [8, 256], strides = [1, 1]} : vector<128x256xf32> to vector<8x256xf32>
    %cst_14 = arith.constant 0.000000e+00 : f32
    %48 = vector.broadcast %cst_14 : f32 to vector<8x16xf32>
    %49 = vector.extract_strided_slice %47 {offsets = [0, 0], sizes = [8, 240], strides = [1, 1]} : vector<8x256xf32> to vector<8x240xf32>
    %50 = tpu.concatenate %48, %49 in 1 : vector<8x16xf32>, vector<8x240xf32> -> vector<8x256xf32>
    %51 = arith.addf %46, %50 : vector<8x256xf32>
    %52 = vector.extract_strided_slice %4 {offsets = [32, 0], sizes = [8, 256], strides = [1, 1]} : vector<128x256xf32> to vector<8x256xf32>
    %cst_15 = arith.constant 0.000000e+00 : f32
    %53 = vector.broadcast %cst_15 : f32 to vector<8x1xf32>
    %54 = vector.extract_strided_slice %52 {offsets = [0, 1], sizes = [8, 255], strides = [1, 1]} : vector<8x256xf32> to vector<8x255xf32>
    %55 = tpu.concatenate %54, %53 in 1 : vector<8x255xf32>, vector<8x1xf32> -> vector<8x256xf32>
    %cst_16 = arith.constant 0.000000e+00 : f32
    %56 = vector.broadcast %cst_16 : f32 to vector<8x256xf32>
    %57 = arith.select %25, %55, %56 : vector<8x256xi1>, vector<8x256xf32>
    %58 = arith.addf %51, %57 : vector<8x256xf32>
    %59 = vector.extract_strided_slice %4 {offsets = [96, 0], sizes = [8, 256], strides = [1, 1]} : vector<128x256xf32> to vector<8x256xf32>
    %cst_17 = arith.constant 0.000000e+00 : f32
    %60 = vector.broadcast %cst_17 : f32 to vector<8x15xf32>
    %61 = vector.extract_strided_slice %59 {offsets = [0, 0], sizes = [8, 241], strides = [1, 1]} : vector<8x256xf32> to vector<8x241xf32>
    %62 = tpu.concatenate %60, %61 in 1 : vector<8x15xf32>, vector<8x241xf32> -> vector<8x256xf32>
    %cst_18 = arith.constant 0.000000e+00 : f32
    %63 = vector.broadcast %cst_18 : f32 to vector<8x256xf32>
    %64 = arith.select %25, %62, %63 : vector<8x256xi1>, vector<8x256xf32>
    %65 = arith.addf %58, %64 : vector<8x256xf32>
    %66 = vector.extract_strided_slice %4 {offsets = [72, 0], sizes = [8, 256], strides = [1, 1]} : vector<128x256xf32> to vector<8x256xf32>
    %67 = vector.extract_strided_slice %4 {offsets = [8, 0], sizes = [8, 256], strides = [1, 1]} : vector<128x256xf32> to vector<8x256xf32>
    %cst_19 = arith.constant 0.000000e+00 : f32
    %68 = vector.broadcast %cst_19 : f32 to vector<8x16xf32>
    %69 = vector.extract_strided_slice %67 {offsets = [0, 16], sizes = [8, 240], strides = [1, 1]} : vector<8x256xf32> to vector<8x240xf32>
    %70 = tpu.concatenate %69, %68 in 1 : vector<8x240xf32>, vector<8x16xf32> -> vector<8x256xf32>
    %71 = arith.addf %66, %70 : vector<8x256xf32>
    %72 = vector.extract_strided_slice %4 {offsets = [88, 0], sizes = [8, 256], strides = [1, 1]} : vector<128x256xf32> to vector<8x256xf32>
    %cst_20 = arith.constant 0.000000e+00 : f32
    %73 = vector.broadcast %cst_20 : f32 to vector<8x1xf32>
    %74 = vector.extract_strided_slice %72 {offsets = [0, 0], sizes = [8, 255], strides = [1, 1]} : vector<8x256xf32> to vector<8x255xf32>
    %75 = tpu.concatenate %73, %74 in 1 : vector<8x1xf32>, vector<8x255xf32> -> vector<8x256xf32>
    %cst_21 = arith.constant 0.000000e+00 : f32
    %76 = vector.broadcast %cst_21 : f32 to vector<8x256xf32>
    %77 = arith.select %23, %75, %76 : vector<8x256xi1>, vector<8x256xf32>
    %78 = arith.addf %71, %77 : vector<8x256xf32>
    %79 = vector.extract_strided_slice %4 {offsets = [24, 0], sizes = [8, 256], strides = [1, 1]} : vector<128x256xf32> to vector<8x256xf32>
    %cst_22 = arith.constant 0.000000e+00 : f32
    %80 = vector.broadcast %cst_22 : f32 to vector<8x15xf32>
    %81 = vector.extract_strided_slice %79 {offsets = [0, 15], sizes = [8, 241], strides = [1, 1]} : vector<8x256xf32> to vector<8x241xf32>
    %82 = tpu.concatenate %81, %80 in 1 : vector<8x241xf32>, vector<8x15xf32> -> vector<8x256xf32>
    %cst_23 = arith.constant 0.000000e+00 : f32
    %83 = vector.broadcast %cst_23 : f32 to vector<8x256xf32>
    %84 = arith.select %23, %82, %83 : vector<8x256xi1>, vector<8x256xf32>
    %85 = arith.addf %78, %84 : vector<8x256xf32>
    %86 = vector.extract_strided_slice %4 {offsets = [80, 0], sizes = [8, 256], strides = [1, 1]} : vector<128x256xf32> to vector<8x256xf32>
    %87 = vector.extract_strided_slice %4 {offsets = [16, 0], sizes = [8, 256], strides = [1, 1]} : vector<128x256xf32> to vector<8x256xf32>
    %cst_24 = arith.constant 0.000000e+00 : f32
    %88 = vector.broadcast %cst_24 : f32 to vector<8x16xf32>
    %89 = vector.extract_strided_slice %87 {offsets = [0, 16], sizes = [8, 240], strides = [1, 1]} : vector<8x256xf32> to vector<8x240xf32>
    %90 = tpu.concatenate %89, %88 in 1 : vector<8x240xf32>, vector<8x16xf32> -> vector<8x256xf32>
    %91 = arith.addf %86, %90 : vector<8x256xf32>
    %92 = vector.extract_strided_slice %4 {offsets = [64, 0], sizes = [8, 256], strides = [1, 1]} : vector<128x256xf32> to vector<8x256xf32>
    %cst_25 = arith.constant 0.000000e+00 : f32
    %93 = vector.broadcast %cst_25 : f32 to vector<8x1xf32>
    %94 = vector.extract_strided_slice %92 {offsets = [0, 1], sizes = [8, 255], strides = [1, 1]} : vector<8x256xf32> to vector<8x255xf32>
    %95 = tpu.concatenate %94, %93 in 1 : vector<8x255xf32>, vector<8x1xf32> -> vector<8x256xf32>
    %cst_26 = arith.constant 0.000000e+00 : f32
    %96 = vector.broadcast %cst_26 : f32 to vector<8x256xf32>
    %97 = arith.select %25, %95, %96 : vector<8x256xi1>, vector<8x256xf32>
    %98 = arith.addf %91, %97 : vector<8x256xf32>
    %99 = vector.extract_strided_slice %4 {offsets = [0, 0], sizes = [8, 256], strides = [1, 1]} : vector<128x256xf32> to vector<8x256xf32>
    %cst_27 = arith.constant 0.000000e+00 : f32
    %100 = vector.broadcast %cst_27 : f32 to vector<8x17xf32>
    %101 = vector.extract_strided_slice %99 {offsets = [0, 17], sizes = [8, 239], strides = [1, 1]} : vector<8x256xf32> to vector<8x239xf32>
    %102 = tpu.concatenate %101, %100 in 1 : vector<8x239xf32>, vector<8x17xf32> -> vector<8x256xf32>
    %cst_28 = arith.constant 0.000000e+00 : f32
    %103 = vector.broadcast %cst_28 : f32 to vector<8x256xf32>
    %104 = arith.select %25, %102, %103 : vector<8x256xi1>, vector<8x256xf32>
    %105 = arith.addf %98, %104 : vector<8x256xf32>
    %cst_29 = arith.constant dense<0.000000e+00> : vector<8xf32>
    %106 = vector.multi_reduction <add>, %45, %cst_29 [1] : vector<8x256xf32> to vector<8xf32>
    %107 = vector.shape_cast %106 : vector<8xf32> to vector<8x1xf32>
    %cst_30 = arith.constant dense<0.000000e+00> : vector<8xf32>
    %108 = vector.multi_reduction <add>, %65, %cst_30 [1] : vector<8x256xf32> to vector<8xf32>
    %109 = vector.shape_cast %108 : vector<8xf32> to vector<8x1xf32>
    %110 = arith.addf %107, %109 : vector<8x1xf32>
    %cst_31 = arith.constant dense<0.000000e+00> : vector<8xf32>
    %111 = vector.multi_reduction <add>, %85, %cst_31 [1] : vector<8x256xf32> to vector<8xf32>
    %112 = vector.shape_cast %111 : vector<8xf32> to vector<8x1xf32>
    %113 = arith.addf %110, %112 : vector<8x1xf32>
    %cst_32 = arith.constant dense<0.000000e+00> : vector<8xf32>
    %114 = vector.multi_reduction <add>, %105, %cst_32 [1] : vector<8x256xf32> to vector<8xf32>
    %115 = vector.shape_cast %114 : vector<8xf32> to vector<8x1xf32>
    %116 = arith.addf %113, %115 : vector<8x1xf32>
    %cst_33 = arith.constant 9.765625E-4 : f32
    %117 = vector.broadcast %cst_33 : f32 to vector<8x1xf32>
    %118 = arith.mulf %116, %117 : vector<8x1xf32>
    %119 = vector.broadcast %118 : vector<8x1xf32> to vector<8x256xf32>
    %120 = arith.subf %45, %119 : vector<8x256xf32>
    %121 = vector.broadcast %118 : vector<8x1xf32> to vector<8x256xf32>
    %122 = arith.subf %65, %121 : vector<8x256xf32>
    %123 = vector.broadcast %118 : vector<8x1xf32> to vector<8x256xf32>
    %124 = arith.subf %85, %123 : vector<8x256xf32>
    %125 = vector.broadcast %118 : vector<8x1xf32> to vector<8x256xf32>
    %126 = arith.subf %105, %125 : vector<8x256xf32>
    %127 = arith.mulf %120, %120 : vector<8x256xf32>
    %cst_34 = arith.constant dense<0.000000e+00> : vector<8xf32>
    %128 = vector.multi_reduction <add>, %127, %cst_34 [1] : vector<8x256xf32> to vector<8xf32>
    %129 = vector.shape_cast %128 : vector<8xf32> to vector<8x1xf32>
    %130 = arith.mulf %122, %122 : vector<8x256xf32>
    %cst_35 = arith.constant dense<0.000000e+00> : vector<8xf32>
    %131 = vector.multi_reduction <add>, %130, %cst_35 [1] : vector<8x256xf32> to vector<8xf32>
    %132 = vector.shape_cast %131 : vector<8xf32> to vector<8x1xf32>
    %133 = arith.addf %129, %132 : vector<8x1xf32>
    %134 = arith.mulf %124, %124 : vector<8x256xf32>
    %cst_36 = arith.constant dense<0.000000e+00> : vector<8xf32>
    %135 = vector.multi_reduction <add>, %134, %cst_36 [1] : vector<8x256xf32> to vector<8xf32>
    %136 = vector.shape_cast %135 : vector<8xf32> to vector<8x1xf32>
    %137 = arith.addf %133, %136 : vector<8x1xf32>
    %138 = arith.mulf %126, %126 : vector<8x256xf32>
    %cst_37 = arith.constant dense<0.000000e+00> : vector<8xf32>
    %139 = vector.multi_reduction <add>, %138, %cst_37 [1] : vector<8x256xf32> to vector<8xf32>
    %140 = vector.shape_cast %139 : vector<8xf32> to vector<8x1xf32>
    %141 = arith.addf %137, %140 : vector<8x1xf32>
    %cst_38 = arith.constant 9.765625E-4 : f32
    %142 = vector.broadcast %cst_38 : f32 to vector<8x1xf32>
    %143 = arith.mulf %141, %142 : vector<8x1xf32>
    %cst_39 = arith.constant 9.99999974E-6 : f32
    %144 = vector.broadcast %cst_39 : f32 to vector<8x1xf32>
    %145 = arith.addf %143, %144 : vector<8x1xf32>
    %146 = math.rsqrt %145 : vector<8x1xf32>
    %147 = vector.broadcast %146 : vector<8x1xf32> to vector<8x256xf32>
    %148 = arith.mulf %120, %147 : vector<8x256xf32>
    %cst_40 = arith.constant 0.000000e+00 : f32
    %149 = vector.broadcast %cst_40 : f32 to vector<8x256xf32>
    %150 = arith.maximumf %148, %149 : vector<8x256xf32>
    %c0_41 = arith.constant 0 : index
    %c0_42 = arith.constant 0 : index
    %c0_43 = arith.constant 0 : index
    %c0_44 = arith.constant 0 : index
    %c0_45 = arith.constant 0 : index
    %151 = vector.load %arg4[%c0_41, %c0_42, %c0_43, %c0_44, %c0_45] : memref<1x2x2x8x256xf32, #tpu.memory_space<vmem>>, vector<1x1x1x8x256xf32>
    %152 = vector.shape_cast %151 : vector<1x1x1x8x256xf32> to vector<8x256xf32>
    %153 = vector.shape_cast %150 : vector<8x256xf32> to vector<1x1x1x8x256xf32>
    tpu.vector_store %arg4[%c0_41, %c0_42, %c0_43, %c0_44, %c0_45], %153 {strides = array<i32>} : memref<1x2x2x8x256xf32, #tpu.memory_space<vmem>>, vector<1x1x1x8x256xf32>,
    %154 = vector.broadcast %146 : vector<8x1xf32> to vector<8x256xf32>
    %155 = arith.mulf %122, %154 : vector<8x256xf32>
    %cst_46 = arith.constant 0.000000e+00 : f32
    %156 = vector.broadcast %cst_46 : f32 to vector<8x256xf32>
    %157 = arith.maximumf %155, %156 : vector<8x256xf32>
    %c0_47 = arith.constant 0 : index
    %c0_48 = arith.constant 0 : index
    %c1 = arith.constant 1 : index
    %c0_49 = arith.constant 0 : index
    %c0_50 = arith.constant 0 : index
    %158 = vector.load %arg4[%c0_47, %c0_48, %c1, %c0_49, %c0_50] : memref<1x2x2x8x256xf32, #tpu.memory_space<vmem>>, vector<1x1x1x8x256xf32>
    %159 = vector.shape_cast %158 : vector<1x1x1x8x256xf32> to vector<8x256xf32>
    %160 = vector.shape_cast %157 : vector<8x256xf32> to vector<1x1x1x8x256xf32>
    tpu.vector_store %arg4[%c0_47, %c0_48, %c1, %c0_49, %c0_50], %160 {strides = array<i32>} : memref<1x2x2x8x256xf32, #tpu.memory_space<vmem>>, vector<1x1x1x8x256xf32>,
    %161 = vector.broadcast %146 : vector<8x1xf32> to vector<8x256xf32>
    %162 = arith.mulf %124, %161 : vector<8x256xf32>
    %cst_51 = arith.constant 0.000000e+00 : f32
    %163 = vector.broadcast %cst_51 : f32 to vector<8x256xf32>
    %164 = arith.maximumf %162, %163 : vector<8x256xf32>
    %c0_52 = arith.constant 0 : index
    %c1_53 = arith.constant 1 : index
    %c0_54 = arith.constant 0 : index
    %c0_55 = arith.constant 0 : index
    %c0_56 = arith.constant 0 : index
    %165 = vector.load %arg4[%c0_52, %c1_53, %c0_54, %c0_55, %c0_56] : memref<1x2x2x8x256xf32, #tpu.memory_space<vmem>>, vector<1x1x1x8x256xf32>
    %166 = vector.shape_cast %165 : vector<1x1x1x8x256xf32> to vector<8x256xf32>
    %167 = vector.shape_cast %164 : vector<8x256xf32> to vector<1x1x1x8x256xf32>
    tpu.vector_store %arg4[%c0_52, %c1_53, %c0_54, %c0_55, %c0_56], %167 {strides = array<i32>} : memref<1x2x2x8x256xf32, #tpu.memory_space<vmem>>, vector<1x1x1x8x256xf32>,
    %168 = vector.broadcast %146 : vector<8x1xf32> to vector<8x256xf32>
    %169 = arith.mulf %126, %168 : vector<8x256xf32>
    %cst_57 = arith.constant 0.000000e+00 : f32
    %170 = vector.broadcast %cst_57 : f32 to vector<8x256xf32>
    %171 = arith.maximumf %169, %170 : vector<8x256xf32>
    %c0_58 = arith.constant 0 : index
    %c1_59 = arith.constant 1 : index
    %c1_60 = arith.constant 1 : index
    %c0_61 = arith.constant 0 : index
    %c0_62 = arith.constant 0 : index
    %172 = vector.load %arg4[%c0_58, %c1_59, %c1_60, %c0_61, %c0_62] : memref<1x2x2x8x256xf32, #tpu.memory_space<vmem>>, vector<1x1x1x8x256xf32>
    %173 = vector.shape_cast %172 : vector<1x1x1x8x256xf32> to vector<8x256xf32>
    %174 = vector.shape_cast %171 : vector<8x256xf32> to vector<1x1x1x8x256xf32>
    tpu.vector_store %arg4[%c0_58, %c1_59, %c1_60, %c0_61, %c0_62], %174 {strides = array<i32>} : memref<1x2x2x8x256xf32, #tpu.memory_space<vmem>>, vector<1x1x1x8x256xf32>,
    return
  }
  func.func @transform_0(%arg0: i32, %arg1: i32) -> (i32, i32, i32) {
    %c0_i32 = arith.constant 0 : i32
    %c0_i32_0 = arith.constant 0 : i32
    %c0_i32_1 = arith.constant 0 : i32
    return %arg0, %c0_i32, %c0_i32_0 : i32, i32, i32
  }
  func.func @transform_1(%arg0: i32, %arg1: i32) -> (i32, i32, i32) {
    %c0_i32 = arith.constant 0 : i32
    %c0_i32_0 = arith.constant 0 : i32
    %c0_i32_1 = arith.constant 0 : i32
    return %arg1, %c0_i32, %c0_i32_0 : i32, i32, i32
  }
  func.func @transform_2(%arg0: i32, %arg1: i32) -> (i32, i32, i32, i32, i32) {
    %c0_i32 = arith.constant 0 : i32
    %c0_i32_0 = arith.constant 0 : i32
    %c0_i32_1 = arith.constant 0 : i32
    %c0_i32_2 = arith.constant 0 : i32
    return %arg0, %c0_i32, %c0_i32_0, %arg1, %c0_i32_1 : i32, i32, i32, i32, i32
  }
}

</mosaic_0001>

<bundles_post_ra>
// kernel: unet_up_forward.1
= control target key start
LH: loop header
LB: loop body
LE: loop exit
PB: predicated region body
PF: predicated region fallthrough
CT: control target
= control target key end

     0   :  { %s903_s9 = smov 0   ;;  %s905_s10 = smov 0   ;;  %s1085_s0 = inlined_call_operand.vmem [shape: bf16[2,8,256], index: 0, kind: input, shape index: {}]   ;;  %s1086_s1 = inlined_call_operand.vmem [shape: bf16[1,128,8], index: 1, kind: input, shape index: {}]   ;;  %s1087_s2 = inlined_call_operand.vmem [shape: f32[2,2,2,8,256], index: 2, kind: output, shape index: {}]  }
   0x1   :  { %s907_s11 = smov 0  }
   0x2 LB: > { %s24_s12 = sadd.s32 1, %s873_s10  ;;  %p774_p0 = scmp.ge.s32.totalorder %s877_s11, 1  ;;  %s877_s11 = sphi %s907_s11, %s12_s11   ;;  %s873_s10 = sphi %s905_s10, %s1097_s10   ;;  %s869_s9 = sphi %s903_s9, %s1096_s9  }
   0x3   : > { %p26_p1 = scmp.ge.s32.totalorder %s24_s12, 2  ;;  %p136_p2 = scmp.lt.s32.totalorder %s877_s11, 3 }
   0x5   : > { %s1099_s12 = smov (%p26_p1, %s24_s12), 0  ;;  %p137_p3 = pnand %p774_p0, %p136_p2 }
   0x6   : > { %p167_p4 = scmp.lt.s32.totalorder (!%p137_p3), %s869_s9, 1  ;;  %v879_v0 = vmov (!%p137_p3), 0   ;;  %vm274_vm0 = vcmask (!%p137_p3), 1043456   ;;  %v845_v5 = vld [vmem:[%s1086_s1] sm:$0xff] (!%p137_p3)   ;;  %vm249_vm1 = vcmask (!%p137_p3), 64512   ;;  %v847_v7 = vld [vmem:[%s1086_s1 + $0x8] sm:$0xff] (!%p137_p3)   ;;  %v394_v45 = vlaneseq (!%p137_p3) }
   0x7   : > { %140 = sbr.rel (%p137_p3) target bundleno = 727 (0x2d7), region = 28  ;;  %313 = vmatprep.mubr.bf16.mxu0 (!%p137_p3), %v879_v0  ;;  %353 = vmatprep.mubr.bf16.mxu1 (!%p137_p3), %v879_v0  ;;  %v846_v6 = vld [vmem:[%s1086_s1 + $0x20] sm:$0xff] (!%p137_p3)   ;;  %v848_v8 = vld [vmem:[%s1086_s1 + $0x28] sm:$0xff] (!%p137_p3)   ;;  %v849_v9 = vld [vmem:[%s1086_s1 + $0x10] sm:$0xff] (!%p137_p3)   ;;  %s880_s5 = smov (!%p137_p3), 127   ;;  %vm516_vm2 = vcmask (!%p137_p3), 916480  }
   0x8   : > { %v850_v10 = vld [vmem:[%s1086_s1 + $0x30] sm:$0xff] (!%p137_p3)   ;;  %v851_v11 = vld [vmem:[%s1086_s1 + $0x38] sm:$0xff] (!%p137_p3)   ;;  %s881_s6 = smov (!%p137_p3), 112   ;;  %s882_s7 = smov (!%p137_p3), 1   ;;  %v395_v48 = vand.u32 (!%p137_p3), 127, %v394_v45  ;;  %vm444_vm3 = vcmask (!%p137_p3), 7168  }
   0x9   : > { %v852_v12 = vld [vmem:[%s1086_s1 + $0x18] sm:$0xff] (!%p137_p3)   ;;  %s883_s8 = smov (!%p137_p3), 113   ;;  %s885_s14 = smov (!%p137_p3), 16   ;;  %vm543_vm6 = vcmask (!%p137_p3), 924672   ;;  %vm431_vm7 = vcmask (!%p137_p3), 130048   ;;  %vm486_vm8 = vcmask (!%p137_p3), 1039360  }
   0xa   : > { %s886_s15 = smov (!%p137_p3), 17   ;;  %v396_v51 = vadd.s32 (!%p137_p3), 128, %v395_v48  ;;  %v401_v54 = vand.u32 (!%p137_p3), 15, %v395_v48  ;;  %vm501_vm9 = vcmask (!%p137_p3), 121856   ;;  %vm459_vm12 = vcmask (!%p137_p3), 138240  }
   0xb   : > { %vm584_vm13 = vcmask (!%p137_p3), 908288  }
   0xc   : > { %v408_v55 = vand.u32 (!%p137_p3), 15, %v396_v51  ;;  %vm987_vm4 = vcmp.ge.s32.totalorder (!%p137_p3), %v401_v54, 1  ;;  %vm1018_vm10 = vcmp.le.s32.totalorder (!%p137_p3), %v401_v54, 14 }
   0xe   : > { %s1101_s9 = smov (!%p167_p4, %s869_s9), 1  ;;  %vm991_vm5 = vcmp.ge.s32.totalorder %v408_v55, 1  ;;  %vm1023_vm11 = vcmp.le.s32.totalorder %v408_v55, 14 }
   0xf   : > { %s806_s13 = sshll.u32 %s1101_s9, 3  ;;  %s807_s17 = sshll.u32 %s1101_s9, 6 }
  0x10   : > { %s171_s16 = scalar_lea.vmem %s1085_s0, %s806_s13  ;;  %s884_s13 = smov 15  }
  0x11   : > { %v203_v1 = vld [vmem:[%s171_s16] sm:$0xff]  ;;  %s887_s16 = smov 111   ;;  %s185_s20 = scalar_lea.vmem %s1087_s2, %s807_s17 }
  0x12   : > { %v788_v2 = vcombine.high %v203_v1, %v203_v1  ;;  %v787_v3 = vcombine.low %v203_v1, %v203_v1 }
  0x14   : > { %789 = vmatprep.subr.msk.bf16.mxu0 %vm274_vm0, %v788_v2  ;;  %808 = vmatprep.subr.msk.bf16.mxu1 %vm274_vm0, %v788_v2  ;;  %v276_v4 = vsel %vm274_vm0, %v787_v3, 0 }
  0x15   : > { %282 = vmatpush1.bf16.msra.mxu0 %v276_v4  ;;  %809 = vmatpush1.bf16.msra.mxu1 %v276_v4 }
  0x18   : > { %790 = vmatmul.mubr.msk.bf16.vlgmr.msra.gmra.mrb[0].mxu0 %vm249_vm1, %v845_v5  ;;  %794 = vmatmul.mubr.msk.bf16.vlgmr.msra.gmra.mrb[0].mxu1 %vm249_vm1, %v846_v6 }
  0x19   : > { %323 = vmatprep.mubr.bf16.mxu0 %v879_v0  ;;  %363 = vmatprep.mubr.bf16.mxu1 %v879_v0 }
  0x20   : > { %791 = vmatmul.mubr.msk.bf16.gmra.mrb[4].mxu0 %vm249_vm1, %v847_v7  ;;  %795 = vmatmul.mubr.msk.bf16.gmra.mrb[4].mxu1 %vm249_vm1, %v848_v8 }
  0x21   : > { %333 = vmatprep.mubr.bf16.mxu0 %v879_v0  ;;  %373 = vmatprep.mubr.bf16.mxu1 %v879_v0 }
  0x28   : > { %792 = vmatmul.mubr.msk.bf16.gmra.mrb[8].mxu0 %vm249_vm1, %v849_v9  ;;  %796 = vmatmul.mubr.msk.bf16.gmra.mrb[8].mxu1 %vm249_vm1, %v850_v10 }
  0x29   : > { %383 = vmatprep.mubr.bf16.mxu1 %v879_v0  ;;  %343 = vmatprep.mubr.bf16.mxu0 %v879_v0 }
  0x30   : > { %797 = vmatmul.mubr.msk.bf16.gmra.mrb[12].mxu1 %vm249_vm1, %v851_v11  ;;  %793 = vmatmul.mubr.msk.bf16.gmra.mrb[12].mxu0 %vm249_vm1, %v852_v12 }
  0xeb   : > { %v315_v13 = vpop.f32.mrb[0].mxu0  ;;  %v355_v14 = vpop.f32.mrb[0].mxu1 }
  0xec   : > { %566 = vrot.lane.b32.xlu0 %v355_v14, %s880_s5  ;;  %v317_v15 = vpop.f32.mrb[1].mxu0  ;;  %v357_v16 = vpop.f32.mrb[1].mxu1 }
  0xed   : > { %568 = vrot.lane.b32.xlu1 %v357_v16, %s880_s5  ;;  %v319_v17 = vpop.f32.mrb[2].mxu0  ;;  %v961_v18 = vpop.f32.mrb[2].mxu1 }
  0xee   : > { %v321_v19 = vpop.f32.mrb[3].mxu0  ;;  %v963_v20 = vpop.f32.mrb[3].mxu1 }
  0xf0   : > { %512 = vrot.lane.b32.xlu0 %v319_v17, %s881_s6 }
  0xf1   : > { %514 = vrot.lane.b32.xlu1 %v321_v19, %s881_s6 }
  0xf3   : > { %v325_v21 = vpop.f32.mrb[4].mxu0  ;;  %v965_v22 = vpop.f32.mrb[4].mxu1 }
  0xf4   : > { %v967_v23 = vpop.f32.mrb[5].mxu1  ;;  %554 = vrot.lane.b32.xlu0 %v325_v21, %s881_s6  ;;  %v327_v24 = vpop.f32.mrb[5].mxu0 }
  0xf5   : > { %v369_v25 = vpop.f32.mrb[6].mxu1  ;;  %556 = vrot.lane.b32.xlu1 %v327_v24, %s881_s6  ;;  %v329_v26 = vpop.f32.mrb[6].mxu0 }
  0xf6   : > { %v331_v27 = vpop.f32.mrb[7].mxu0  ;;  %v371_v28 = vpop.f32.mrb[7].mxu1 }
  0xf8   : > { %525 = vrot.lane.b32.xlu0 %v369_v25, %s882_s7 }
  0xf9   : > { %527 = vrot.lane.b32.xlu1 %v371_v28, %s882_s7 }
  0xfb   : > { %v335_v29 = vpop.f32.mrb[8].mxu0  ;;  %v375_v30 = vpop.f32.mrb[8].mxu1 }
  0xfc   : > { %539 = vrot.lane.b32.xlu0 %v329_v26, %s883_s8  ;;  %v337_v31 = vpop.f32.mrb[9].mxu0  ;;  %v377_v32 = vpop.f32.mrb[9].mxu1 }
  0xfd   : > { %541 = vrot.lane.b32.xlu1 %v331_v27, %s883_s8  ;;  %v971_v33 = vpop.f32.mrb[10].mxu0  ;;  %v379_v34 = vpop.f32.mrb[10].mxu1 }
  0xfe   : > { %v973_v35 = vpop.f32.mrb[11].mxu0  ;;  %v381_v36 = vpop.f32.mrb[11].mxu1 }
 0x100   : > { %482 = vrot.lane.b32.xlu0 %v335_v29, %s880_s5 }
 0x101   : > { %484 = vrot.lane.b32.xlu1 %v337_v31, %s880_s5 }
 0x103   : > { %v385_v37 = vpop.f32.mrb[12].mxu1  ;;  %v977_v38 = vpop.f32.mrb[12].mxu0 }
 0x104   : > { %497 = vrot.lane.b32.xlu0 %v375_v30, %s884_s13  ;;  %v387_v39 = vpop.f32.mrb[13].mxu1  ;;  %v979_v40 = vpop.f32.mrb[13].mxu0 }
 0x105   : > { %499 = vrot.lane.b32.xlu1 %v377_v32, %s884_s13  ;;  %v389_v41 = vpop.f32.mrb[14].mxu1  ;;  %v349_v42 = vpop.f32.mrb[14].mxu0 }
 0x106   : > { %v391_v43 = vpop.f32.mrb[15].mxu1  ;;  %v351_v44 = vpop.f32.mrb[15].mxu0 }
 0x108   : > { %427 = vrot.lane.b32.xlu0 %v379_v34, %s885_s14 }
 0x109   : > { %470 = vrot.lane.b32.xlu1 %v385_v37, %s885_s14 }
 0x10c   : > { %429 = vrot.lane.b32.xlu0 %v381_v36, %s885_s14 }
 0x10d   : > { %472 = vrot.lane.b32.xlu1 %v387_v39, %s885_s14 }
 0x110   : > { %440 = vrot.lane.b32.xlu0 %v349_v42, %s882_s7 }
 0x111   : > { %442 = vrot.lane.b32.xlu1 %v351_v44, %s882_s7 }
 0x114   : > { %455 = vrot.lane.b32.xlu0 %v389_v41, %s886_s15 }
 0x115   : > { %457 = vrot.lane.b32.xlu1 %v391_v43, %s886_s15 }
 0x118   : > { %580 = vrot.lane.b32.xlu0 %v315_v13, %s887_s16 }
 0x119   : > { %582 = vrot.lane.b32.xlu1 %v317_v15, %s887_s16 }
 0x15e   : > { %v983_v46 = vpop.permute.xlu0 %566 }
 0x15f   : > { %v985_v47 = vpop.permute.xlu1 %568 }
 0x162   : > { %v513_v49 = vpop.permute.xlu0 %512 }
 0x163   : > { %v515_v50 = vpop.permute.xlu1 %514 }
 0x164   : > { %v517_v59 = vsel %vm516_vm2, %v513_v49, %v515_v50  ;;  %v520_v60 = vsel %vm516_vm2, %v515_v50, 0.0 }
 0x165   : > { %v521_v2 = vadd.f32 %v517_v59, %v961_v18  ;;  %v522_v3 = vadd.f32 %v520_v60, %v963_v20  ;;  %v570_v60 = vsel %vm486_vm8, %v983_v46, %v985_v47 }
 0x166   : > { %v555_v52 = vpop.permute.xlu0 %554 }
 0x167   : > { %v557_v53 = vpop.permute.xlu1 %556 }
 0x168   : > { %v558_v39 = vsel %vm516_vm2, %v555_v52, %v557_v53  ;;  %v561_v44 = vsel %vm516_vm2, %v557_v53, 0.0 }
 0x16a   : > { %v526_v57 = vpop.permute.xlu0 %525 }
 0x16b   : > { %v532_v61 = vsel %vm444_vm3, 0.0, %v526_v57  ;;  %v528_v62 = vpop.permute.xlu1 %527 }
 0x16c   : > { %v529_v63 = vsel %vm444_vm3, %v526_v57, %v528_v62  ;;  %v533_v0 = vsel %vm987_vm4, %v532_v61, 0.0  ;;  %v573_v61 = vsel %vm486_vm8, %v985_v47, 0.0 }
 0x16d   : > { %v534_v1 = vsel %vm991_vm5, %v529_v63, 0.0  ;;  %v535_v6 = vadd.f32 %v533_v0, %v521_v2  ;;  %v562_v0 = vadd.f32 %v558_v39, %v965_v22  ;;  %v574_v22 = vsel %vm1018_vm10, %v570_v60, 0.0 }
 0x16e   : > { %v540_v4 = vpop.permute.xlu0 %539  ;;  %v536_v7 = vadd.f32 %v534_v1, %v522_v3 }
 0x16f   : > { %v542_v5 = vpop.permute.xlu1 %541 }
 0x170   : > { %v544_v8 = vsel %vm543_vm6, %v540_v4, %v542_v5  ;;  %v547_v9 = vsel %vm543_vm6, %v542_v5, 0.0  ;;  %v563_v4 = vadd.f32 %v561_v44, %v967_v23  ;;  %v575_v23 = vsel %vm1023_vm11, %v573_v61, 0.0 }
 0x171   : > { %v548_v10 = vsel %vm987_vm4, %v544_v8, 0.0  ;;  %v549_v11 = vsel %vm991_vm5, %v547_v9, 0.0  ;;  %v576_v9 = vadd.f32 %v574_v22, %v562_v0 }
 0x172   : > { %v483_v12 = vpop.permute.xlu0 %482  ;;  %v1009_v13 = vadd.f32 %v548_v10, %v535_v6  ;;  %v1011_v14 = vadd.f32 %v549_v11, %v536_v7  ;;  %v577_v56 = vadd.f32 %v575_v23, %v563_v4 }
 0x173   : > { %v485_v15 = vpop.permute.xlu1 %484 }
 0x174   : > { %v600_v16 = vadd.f32 %v1011_v14, %v1009_v13  ;;  %v487_v24 = vsel %vm486_vm8, %v483_v12, %v485_v15  ;;  %v490_v28 = vsel %vm486_vm8, %v485_v15, 0.0 }
 0x175   : > { %v491_v31 = vsel %vm1018_vm10, %v487_v24, 0.0  ;;  %v492_v41 = vsel %vm1023_vm11, %v490_v28, 0.0 }
 0x176   : > { %v498_v17 = vpop.permute.xlu0 %497  ;;  %601 = vadd.xlane.f32.xlu0 %v600_v16 }
 0x177   : > { %v500_v18 = vpop.permute.xlu1 %499  ;;  %v505_v34 = vsel %vm501_vm9, 0.0, %v498_v17 }
 0x178   : > { %v502_v36 = vsel %vm501_vm9, %v498_v17, %v500_v18 }
 0x179   : > { %v507_v51 = vsel %vm1023_vm11, %v502_v36, 0.0 }
 0x17a   : > { %v428_v19 = vpop.permute.xlu0 %427 }
 0x17b   : > { %v471_v20 = vpop.permute.xlu1 %470  ;;  %v435_v42 = vsel %vm431_vm7, 0.0, %v428_v19 }
 0x17c   : > { %v477_v21 = vsel %vm431_vm7, 0.0, %v471_v20  ;;  %v436_v55 = vadd.f32 %v435_v42, %v971_v33 }
 0x17d   : > { %v478_v25 = vadd.f32 %v477_v21, %v977_v38 }
 0x17e   : > { %v430_v26 = vpop.permute.xlu0 %429 }
 0x17f   : > { %v473_v29 = vpop.permute.xlu1 %472  ;;  %v493_v37 = vadd.f32 %v491_v31, %v478_v25  ;;  %v432_v45 = vsel %vm431_vm7, %v428_v19, %v430_v26 }
 0x180   : > { %v474_v32 = vsel %vm431_vm7, %v471_v20, %v473_v29  ;;  %v437_v62 = vadd.f32 %v432_v45, %v973_v35 }
 0x181   : > { %v479_v38 = vadd.f32 %v474_v32, %v979_v40  ;;  %v506_v40 = vsel %vm1018_vm10, %v505_v34, 0.0 }
 0x182   : > { %v441_v43 = vpop.permute.xlu0 %440  ;;  %v508_v57 = vadd.f32 %v506_v40, %v493_v37 }
 0x183   : > { %v494_v48 = vadd.f32 %v492_v41, %v479_v38  ;;  %v448_v49 = vsel %vm444_vm3, 0.0, %v441_v43  ;;  %v443_v50 = vpop.permute.xlu1 %442 }
 0x184   : > { %v449_v52 = vsel %vm987_vm4, %v448_v49, 0.0  ;;  %v445_v54 = vsel %vm444_vm3, %v441_v43, %v443_v50 }
 0x185   : > { %v450_v53 = vsel %vm991_vm5, %v445_v54, 0.0  ;;  %v509_v59 = vadd.f32 %v507_v51, %v494_v48  ;;  %v451_v1 = vadd.f32 %v449_v52, %v436_v55 }
 0x186   : > { %v456_v63 = vpop.permute.xlu0 %455  ;;  %v452_v5 = vadd.f32 %v450_v53, %v437_v62 }
 0x187   : > { %v463_v33 = vsel %vm459_vm12, 0.0, %v456_v63  ;;  %v458_v2 = vpop.permute.xlu1 %457  ;;  %v596_v3 = vadd.f32 %v509_v59, %v508_v57 }
 0x188   : > { %v464_v6 = vsel %vm987_vm4, %v463_v33, 0.0  ;;  %v460_v46 = vsel %vm459_vm12, %v456_v63, %v458_v2 }
 0x189   : > { %v465_v47 = vsel %vm991_vm5, %v460_v46, 0.0  ;;  %597 = vadd.xlane.f32.xlu1 %v596_v3  ;;  %v466_v35 = vadd.f32 %v464_v6, %v451_v1 }
 0x18a   : > { %v581_v7 = vpop.permute.xlu0 %580  ;;  %v467_v8 = vadd.f32 %v465_v47, %v452_v5 }
 0x18b   : > { %v583_v10 = vpop.permute.xlu1 %582 }
 0x18c   : > { %v585_v11 = vsel %vm584_vm13, %v581_v7, %v583_v10  ;;  %v588_v12 = vsel %vm584_vm13, %v583_v10, 0.0  ;;  %v593_v15 = vadd.f32 %v467_v8, %v466_v35 }
 0x18d   : > { %v589_v58 = vsel %vm1018_vm10, %v585_v11, 0.0  ;;  %v590_v16 = vsel %vm1023_vm11, %v588_v12, 0.0 }
 0x18e   : > { %594 = vadd.xlane.f32.xlu0 %v593_v15  ;;  %v591_v17 = vadd.f32 %v589_v58, %v576_v9  ;;  %v592_v18 = vadd.f32 %v590_v16, %v577_v56 }
 0x190   : > { %v604_v19 = vadd.f32 %v592_v18, %v591_v17 }
 0x192   : > { %605 = vadd.xlane.f32.xlu0 %v604_v19 }
 0x203   : > { %v602_v20 = vpop.xlane.xlu0 %601 }
 0x216   : > { %v598_v21 = vpop.xlane.xlu1 %597 }
 0x21b   : > { %v595_v24 = vpop.xlane.xlu0 %594 }
 0x21c   : > { %v599_v25 = vadd.f32 %v598_v21, %v595_v24 }
 0x21e   : > { %v603_v26 = vadd.f32 %v602_v20, %v599_v25 }
 0x21f   : > { %v606_v28 = vpop.xlane.xlu0 %605 }
 0x220   : > { %v607_v29 = vadd.f32 %v606_v28, %v603_v26 }
 0x222   : > { %v608_v31 = vmul.f32 0.0009765625, %v607_v29 }
 0x224   : > { %v611_v32 = vsub.f32 %v508_v57, %v608_v31  ;;  %v612_v34 = vsub.f32 %v509_v59, %v608_v31  ;;  %v609_v27 = vsub.f32 %v466_v35, %v608_v31  ;;  %v610_v36 = vsub.f32 %v467_v8, %v608_v31 }
 0x225   : > { %v615_v37 = vsub.f32 %v591_v17, %v608_v31  ;;  %v616_v30 = vsub.f32 %v592_v18, %v608_v31  ;;  %v613_v38 = vsub.f32 %v1009_v13, %v608_v31  ;;  %v614_v39 = vsub.f32 %v1011_v14, %v608_v31 }
 0x226   : > { %v622_v41 = vmul.f32 %v611_v32, %v611_v32  ;;  %v623_v42 = vmul.f32 %v612_v34, %v612_v34  ;;  %v617_v43 = vmul.f32 %v609_v27, %v609_v27  ;;  %v618_v44 = vmul.f32 %v610_v36, %v610_v36 }
 0x227   : > { %v634_v45 = vmul.f32 %v615_v37, %v615_v37  ;;  %v635_v48 = vmul.f32 %v616_v30, %v616_v30  ;;  %v628_v40 = vmul.f32 %v613_v38, %v613_v38  ;;  %v629_v51 = vmul.f32 %v614_v39, %v614_v39 }
 0x228   : > { %v624_v49 = vadd.f32 %v623_v42, %v622_v41  ;;  %v619_v50 = vadd.f32 %v618_v44, %v617_v43 }
 0x229   : > { %v636_v52 = vadd.f32 %v635_v48, %v634_v45  ;;  %v630_v54 = vadd.f32 %v629_v51, %v628_v40 }
 0x22a   : > { %625 = vadd.xlane.f32.xlu0 %v624_v49  ;;  %620 = vadd.xlane.f32.xlu1 %v619_v50 }
 0x22e   : > { %637 = vadd.xlane.f32.xlu0 %v636_v52  ;;  %631 = vadd.xlane.f32.xlu1 %v630_v54 }
 0x2b7   : > { %v626_v13 = vpop.xlane.xlu0 %625  ;;  %v621_v55 = vpop.xlane.xlu1 %620 }
 0x2b8   : > { %v627_v14 = vadd.f32 %v626_v13, %v621_v55 }
 0x2bb   : > { %v632_v53 = vpop.xlane.xlu1 %631  ;;  %v638_v59 = vpop.xlane.xlu0 %637 }
 0x2bc   : > { %v633_v57 = vadd.f32 %v632_v53, %v627_v14 }
 0x2be   : > { %v639_v60 = vadd.f32 %v638_v59, %v633_v57 }
 0x2c0   : > { %v640_v61 = vmul.f32 0.0009765625, %v639_v60 }
 0x2c2   : > { %v641_v62 = vadd.f32 1e-05, %v640_v61 }
 0x2c4   : > { %853 = vrsqrt.f32 %v641_v62 }
 0x2ce   : > { %v854_v63 = vpop.eup %853 }
 0x2cf   : > { %v643_v0 = vmul.f32 %v854_v63, %v609_v27  ;;  %v644_v1 = vmul.f32 %v854_v63, %v610_v36  ;;  %v649_v33 = vmul.f32 %v854_v63, %v611_v32  ;;  %v650_v2 = vmul.f32 %v854_v63, %v612_v34 }
 0x2d0   : > { %v656_v3 = vmul.f32 %v854_v63, %v613_v38  ;;  %v657_v4 = vmul.f32 %v854_v63, %v614_v39  ;;  %v663_v5 = vmul.f32 %v854_v63, %v615_v37  ;;  %v664_v6 = vmul.f32 %v854_v63, %v616_v30 }
 0x2d1   : > { %v645_v46 = vmax.f32 %v643_v0, 0.0  ;;  %v646_v47 = vmax.f32 %v644_v1, 0.0  ;;  %v651_v35 = vmax.f32 %v649_v33, 0.0  ;;  %v652_v22 = vmax.f32 %v650_v2, 0.0 }
 0x2d2   : > { %v658_v7 = vmax.f32 %v656_v3, 0.0  ;;  %v659_v8 = vmax.f32 %v657_v4, 0.0  ;;  %v665_v23 = vmax.f32 %v663_v5, 0.0  ;;  %v666_v9 = vmax.f32 %v664_v6, 0.0 }
 0x2d3   : > { %647 = vst [vmem:[%s185_s20] sm:$0xff] %v645_v46  ;;  %648 = vst [vmem:[%s185_s20 + $0x8] sm:$0xff] %v646_v47 }
 0x2d4   : > { %798 = vst [vmem:[%s185_s20 + $0x10] sm:$0xff] %v651_v35  ;;  %799 = vst [vmem:[%s185_s20 + $0x18] sm:$0xff] %v652_v22 }
 0x2d5   : > { %800 = vst [vmem:[%s185_s20 + $0x20] sm:$0xff] %v658_v7  ;;  %801 = vst [vmem:[%s185_s20 + $0x28] sm:$0xff] %v659_v8 }
 0x2d6   : > { %802 = vst [vmem:[%s185_s20 + $0x30] sm:$0xff] %v665_v23  ;;  %803 = vst [vmem:[%s185_s20 + $0x38] sm:$0xff] %v666_v9 }
 0x2d7 PF: > { %s12_s11 = sadd.s32 1, %s877_s11   ;;  %s1096_s9 = smov %s873_s10 }
 0x2d8   : > { %p9_p5 = scmp.ge.s32.totalorder %s12_s11, 4   ;;  %s1097_s10 = smov %s1099_s12 }
 0x2da   :  { %11 = sbr.rel (!%p9_p5) target bundleno = 2 (0x2), region = 64 }

</bundles_post_ra>
